<compile_context>
chip_gen: v7x
topology: tpu7x:2x2x1
jax: 0.10.0
libtpu: 0.0.40
codegen_flags: <defaults>
</compile_context>

<pallas_src>
import functools

import jax
import jax.numpy as jnp
from jax.experimental import pallas as pl
from jax.experimental.pallas import tpu as pltpu


def _round_up(a, b):
    return (a + b - 1) // b * b


def _make_conv_bn_relu_kernel(taps, n_lt, tl, cout):
    """Fused 3x3 conv + BN-bias + ReLU kernel (one image per grid step).

    Refs:
      w_ref: (9, Cout, Cin)      BN-scale-folded conv taps (resident across the grid)
      b_ref: (Cout, 1) f32       folded BN bias (beta - mean*scale)
      x_ref: (1, s*s, Cin, Lin)  space-to-depth'd padded input planes, flat spatial axis
      o_ref: (1, Cout, Lpad)     output on the flat (ho*Ws + wo) grid (junk cols sliced by wrapper)
    """
    def kernel(w_ref, b_ref, x_ref, o_ref):
        w_taps = [w_ref[t] for t in range(len(taps))]   # 9 x (Cout, Cin), loaded once
        bias = b_ref[...]                               # (Cout, 1) f32
        for lt in range(n_lt):                          # static unroll; acc stays in vregs
            base = lt * tl
            acc = jnp.zeros((cout, tl), jnp.float32)
            for t, (plane, delta) in enumerate(taps):   # static 9-tap loop, static slices
                xs = x_ref[0, plane, :, base + delta: base + delta + tl]   # (Cin, TL)
                acc = acc + jnp.dot(w_taps[t], xs,
                                    preferred_element_type=jnp.float32)
            y = jnp.maximum(acc + bias, 0.0)
            o_ref[0, :, base:base + tl] = y.astype(o_ref.dtype)
    return kernel


@functools.partial(jax.jit, static_argnames=("stride", "compute_dtype", "out_dtype"))
def conv_bn_forward(x_nchw, weight, gamma, beta, running_mean, running_var,
                    stride=2, eps=1e-5, compute_dtype=jnp.bfloat16, out_dtype=None):
    """Conv_bn.forward (eval-mode BN): Conv2d(3x3, stride, pad=1, no bias) -> BN -> ReLU.

    x_nchw:  (N, Cin, H, W)     float32
    weight:  (Cout, Cin, 3, 3)  float32 (PyTorch OIHW layout)
    returns: (N, Cout, Ho, Wo)
    """
    N, Cin, H, W = x_nchw.shape
    Cout = weight.shape[0]
    KH = KW = 3
    pad = 1
    s = int(stride)
    ss = s * s
    Ho = (H + 2 * pad - KH) // s + 1
    Wo = (W + 2 * pad - KW) // s + 1

    # ---- padded extent actually read by the conv, rounded to a multiple of the stride ----
    Hneed = s * (Ho - 1) + KH
    Wneed = s * (Wo - 1) + KW
    Hp = _round_up(Hneed, s)
    Wp = _round_up(Wneed, s)
    Hs, Ws = Hp // s, Wp // s

    # ---- one input-sized relayout (pad + space-to-depth), fused by XLA; NO 9x im2col ----
    xq = jnp.pad(x_nchw, ((0, 0), (0, 0),
                          (pad, max(Hp - H - pad, 0)),
                          (pad, max(Wp - W - pad, 0))))[:, :, :Hp, :Wp]
    x4 = xq.reshape(N, Cin, Hs, s, Ws, s)
    x4 = jnp.transpose(x4, (0, 3, 5, 1, 2, 4)).reshape(N, ss, Cin, Hs * Ws)

    # ---- flat-spatial tiling: L = Ho*Ws positions/image (cols wo >= Wo are junk, sliced later) ----
    LANE = 128
    L = Ho * Ws
    TL = min(512, _round_up(L, LANE))       # f32 accumulator width kept vreg-resident
    Lpad = _round_up(L, TL)
    n_lt = Lpad // TL
    dmax = ((KH - 1) // s) * Ws + ((KW - 1) // s)
    Lin = _round_up(max(Hs * Ws, Lpad + dmax), LANE)
    x4 = jnp.pad(x4, ((0, 0), (0, 0), (0, 0), (0, Lin - Hs * Ws))).astype(compute_dtype)

    # tap -> (parity plane, flat offset): padded pixel (kh + s*ho, kw + s*wo) lives in plane
    # (kh % s, kw % s) at flat index (ho*Ws + wo) + delta with delta = (kh//s)*Ws + (kw//s).
    taps = [((kh % s) * s + (kw % s), (kh // s) * Ws + (kw // s))
            for kh in range(KH) for kw in range(KW)]

    # ---- fold eval-mode BN into weight / bias ----
    scale = gamma / jnp.sqrt(running_var + eps)                       # (Cout,)
    bias2d = (beta - running_mean * scale).reshape(Cout, 1).astype(jnp.float32)
    w9 = (weight * scale[:, None, None, None]).transpose(2, 3, 0, 1)  # (3, 3, Cout, Cin)
    w9 = w9.reshape(KH * KW, Cout, Cin).astype(compute_dtype)

    odt = x_nchw.dtype if out_dtype is None else out_dtype
    in_b = jnp.dtype(compute_dtype).itemsize
    out_b = jnp.dtype(odt).itemsize
    cost = pl.CostEstimate(
        flops=2 * N * Lpad * Cout * Cin * KH * KW,
        transcendentals=0,
        bytes_accessed=(N * ss * Cin * Lin * in_b + N * Cout * Lpad * out_b
                        + KH * KW * Cout * Cin * in_b + Cout * 4),
    )

    kernel = _make_conv_bn_relu_kernel(taps, n_lt, TL, Cout)
    out_flat = pl.pallas_call(
        kernel,
        out_shape=jax.ShapeDtypeStruct((N, Cout, Lpad), odt),
        grid_spec=pltpu.PrefetchScalarGridSpec(
            num_scalar_prefetch=0,
            grid=(N,),                     # one image per step; N>=2 feeds both v7x TensorCores
            in_specs=[
                pl.BlockSpec((KH * KW, Cout, Cin), lambda n: (0, 0, 0)),   # folded taps (resident)
                pl.BlockSpec((Cout, 1), lambda n: (0, 0)),                 # folded BN bias
                pl.BlockSpec((1, ss, Cin, Lin), lambda n: (n, 0, 0, 0)),   # one image's s2d planes
            ],
            out_specs=pl.BlockSpec((1, Cout, Lpad), lambda n: (n, 0, 0)),
        ),
        compiler_params=pltpu.CompilerParams(
            dimension_semantics=("parallel",)),
        cost_estimate=cost,
    )(w9, bias2d, x4)

    # flat (ho*Ws + wo) -> NCHW; the only post-kernel copy is the narrow Ws -> Wo slice.
    out = out_flat[:, :, :L].reshape(N, Cout, Ho, Ws)[:, :, :, :Wo]
    return out


if __name__ == "__main__":
    # small shapes consistent with Conv_bn(inp=4, oup=8, stride=2)
    N, Cin, H, W = 2, 4, 16, 16
    Cout, stride = 8, 2

    key = jax.random.PRNGKey(0)
    k_x, k_w, k_g, k_b, k_m, k_v = jax.random.split(key, 6)

    x = jax.random.normal(k_x, (N, Cin, H, W), dtype=jnp.float32)
    weight = jax.random.normal(k_w, (Cout, Cin, 3, 3), dtype=jnp.float32) * 0.1
    gamma = jax.random.normal(k_g, (Cout,), dtype=jnp.float32) * 0.1 + 1.0
    beta = jax.random.normal(k_b, (Cout,), dtype=jnp.float32) * 0.1
    running_mean = jax.random.normal(k_m, (Cout,), dtype=jnp.float32) * 0.1
    running_var = jax.random.uniform(k_v, (Cout,), dtype=jnp.float32,
                                     minval=0.5, maxval=1.5)

    def reference(xin, st):
        r = jax.lax.conv_general_dilated(
            xin, weight, window_strides=(st, st), padding=((1, 1), (1, 1)),
            dimension_numbers=("NCHW", "OIHW", "NCHW"))
        sc = gamma / jnp.sqrt(running_var + 1e-5)
        bs = beta - running_mean * sc
        return jnp.maximum(r * sc[None, :, None, None] + bs[None, :, None, None], 0.0)

    # exact path: f32 streaming
    out_f32 = jax.block_until_ready(
        conv_bn_forward(x, weight, gamma, beta, running_mean, running_var,
                        stride=stride, compute_dtype=jnp.float32))
    ref2 = reference(x, stride)
    assert out_f32.shape == (N, Cout, H // stride, W // stride), out_f32.shape
    assert jnp.allclose(out_f32, ref2, atol=1e-4, rtol=1e-4), \
        float(jnp.max(jnp.abs(out_f32 - ref2)))

    # default bandwidth-oriented path: bf16 streamed operands, f32 MXU accumulation
    out_bf16 = jax.block_until_ready(
        conv_bn_forward(x, weight, gamma, beta, running_mean, running_var, stride=stride))
    assert out_bf16.shape == ref2.shape
    assert float(jnp.max(jnp.abs(out_bf16 - ref2))) < 0.1

    # stride=1 exercises the degenerate (single parity plane) space-to-depth path
    out_s1 = jax.block_until_ready(
        conv_bn_forward(x, weight, gamma, beta, running_mean, running_var,
                        stride=1, compute_dtype=jnp.float32))
    ref1 = reference(x, 1)
    assert out_s1.shape == ref1.shape
    assert jnp.allclose(out_s1, ref1, atol=1e-4, rtol=1e-4), \
        float(jnp.max(jnp.abs(out_s1 - ref1)))

    print("KERNEL_OK")
</pallas_src>

<mosaic_0001>
module attributes {stable_mosaic.version = 11 : i64} {
  func.func @kernel(%arg0: i32, %arg1: memref<9x8x4xf32, #tpu.memory_space<vmem>>, %arg2: memref<8x1xf32, #tpu.memory_space<vmem>>, %arg3: memref<1x4x4x256xf32, #tpu.memory_space<vmem>>, %arg4: memref<1x8x128xf32, #tpu.memory_space<vmem>>) attributes {dimension_semantics = [#tpu.dimension_semantics<parallel>], iteration_bounds = array<i64: 2>, scalar_prefetch = 0 : i64, scratch_operands = 0 : i64, tpu.core_type = #tpu.core_type<tc>, window_params = [{pipeline_mode = #tpu.pipeline_mode<synchronous>, transform_indices = @transform_0, window_bounds = array<i64: 9, 8, 4>}, {pipeline_mode = #tpu.pipeline_mode<synchronous>, transform_indices = @transform_1, window_bounds = array<i64: 8, 1>}, {transform_indices = @transform_2, window_bounds = array<i64: 1, 4, 4, 256>}, {transform_indices = @transform_3, window_bounds = array<i64: 1, 8, 128>}]} {
    %c0 = arith.constant 0 : index
    %c0_0 = arith.constant 0 : index
    %c0_1 = arith.constant 0 : index
    %0 = vector.load %arg1[%c0, %c0_0, %c0_1] : memref<9x8x4xf32, #tpu.memory_space<vmem>>, vector<1x8x4xf32>
    %1 = vector.shape_cast %0 : vector<1x8x4xf32> to vector<8x4xf32>
    %c1 = arith.constant 1 : index
    %c0_2 = arith.constant 0 : index
    %c0_3 = arith.constant 0 : index
    %2 = vector.load %arg1[%c1, %c0_2, %c0_3] : memref<9x8x4xf32, #tpu.memory_space<vmem>>, vector<1x8x4xf32>
    %3 = vector.shape_cast %2 : vector<1x8x4xf32> to vector<8x4xf32>
    %c2 = arith.constant 2 : index
    %c0_4 = arith.constant 0 : index
    %c0_5 = arith.constant 0 : index
    %4 = vector.load %arg1[%c2, %c0_4, %c0_5] : memref<9x8x4xf32, #tpu.memory_space<vmem>>, vector<1x8x4xf32>
    %5 = vector.shape_cast %4 : vector<1x8x4xf32> to vector<8x4xf32>
    %c3 = arith.constant 3 : index
    %c0_6 = arith.constant 0 : index
    %c0_7 = arith.constant 0 : index
    %6 = vector.load %arg1[%c3, %c0_6, %c0_7] : memref<9x8x4xf32, #tpu.memory_space<vmem>>, vector<1x8x4xf32>
    %7 = vector.shape_cast %6 : vector<1x8x4xf32> to vector<8x4xf32>
    %c4 = arith.constant 4 : index
    %c0_8 = arith.constant 0 : index
    %c0_9 = arith.constant 0 : index
    %8 = vector.load %arg1[%c4, %c0_8, %c0_9] : memref<9x8x4xf32, #tpu.memory_space<vmem>>, vector<1x8x4xf32>
    %9 = vector.shape_cast %8 : vector<1x8x4xf32> to vector<8x4xf32>
    %c5 = arith.constant 5 : index
    %c0_10 = arith.constant 0 : index
    %c0_11 = arith.constant 0 : index
    %10 = vector.load %arg1[%c5, %c0_10, %c0_11] : memref<9x8x4xf32, #tpu.memory_space<vmem>>, vector<1x8x4xf32>
    %11 = vector.shape_cast %10 : vector<1x8x4xf32> to vector<8x4xf32>
    %c6 = arith.constant 6 : index
    %c0_12 = arith.constant 0 : index
    %c0_13 = arith.constant 0 : index
    %12 = vector.load %arg1[%c6, %c0_12, %c0_13] : memref<9x8x4xf32, #tpu.memory_space<vmem>>, vector<1x8x4xf32>
    %13 = vector.shape_cast %12 : vector<1x8x4xf32> to vector<8x4xf32>
    %c7 = arith.constant 7 : index
    %c0_14 = arith.constant 0 : index
    %c0_15 = arith.constant 0 : index
    %14 = vector.load %arg1[%c7, %c0_14, %c0_15] : memref<9x8x4xf32, #tpu.memory_space<vmem>>, vector<1x8x4xf32>
    %15 = vector.shape_cast %14 : vector<1x8x4xf32> to vector<8x4xf32>
    %c8 = arith.constant 8 : index
    %c0_16 = arith.constant 0 : index
    %c0_17 = arith.constant 0 : index
    %16 = vector.load %arg1[%c8, %c0_16, %c0_17] : memref<9x8x4xf32, #tpu.memory_space<vmem>>, vector<1x8x4xf32>
    %17 = vector.shape_cast %16 : vector<1x8x4xf32> to vector<8x4xf32>
    %c0_18 = arith.constant 0 : index
    %c0_19 = arith.constant 0 : index
    %18 = vector.load %arg2[%c0_18, %c0_19] : memref<8x1xf32, #tpu.memory_space<vmem>>, vector<8x1xf32>
    %cst = arith.constant 0.000000e+00 : f32
    %19 = vector.broadcast %cst : f32 to vector<8x128xf32>
    %c0_20 = arith.constant 0 : index
    %c0_21 = arith.constant 0 : index
    %c0_22 = arith.constant 0 : index
    %c0_23 = arith.constant 0 : index
    %20 = vector.load %arg3[%c0_20, %c0_21, %c0_22, %c0_23] : memref<1x4x4x256xf32, #tpu.memory_space<vmem>>, vector<1x1x4x128xf32>
    %21 = vector.shape_cast %20 : vector<1x1x4x128xf32> to vector<4x128xf32>
    %cst_24 = arith.constant dense<0.000000e+00> : vector<8x128xf32>
    %22 = tpu.matmul %1, %21, %cst_24 {dimension_numbers = #tpu.dot_dimension_numbers<[1], [0], [0], [1], [0, 0, 1, 1], [], []>} : vector<8x4xf32>, vector<4x128xf32>, vector<8x128xf32> -> vector<8x128xf32>
    %23 = arith.addf %19, %22 : vector<8x128xf32>
    %c0_25 = arith.constant 0 : index
    %c1_26 = arith.constant 1 : index
    %c0_27 = arith.constant 0 : index
    %c0_28 = arith.constant 0 : index
    %24 = vector.load %arg3[%c0_25, %c1_26, %c0_27, %c0_28] : memref<1x4x4x256xf32, #tpu.memory_space<vmem>>, vector<1x1x4x128xf32>
    %25 = vector.shape_cast %24 : vector<1x1x4x128xf32> to vector<4x128xf32>
    %cst_29 = arith.constant dense<0.000000e+00> : vector<8x128xf32>
    %26 = tpu.matmul %3, %25, %cst_29 {dimension_numbers = #tpu.dot_dimension_numbers<[1], [0], [0], [1], [0, 0, 1, 1], [], []>} : vector<8x4xf32>, vector<4x128xf32>, vector<8x128xf32> -> vector<8x128xf32>
    %27 = arith.addf %23, %26 : vector<8x128xf32>
    %c0_30 = arith.constant 0 : index
    %c0_31 = arith.constant 0 : index
    %c0_32 = arith.constant 0 : index
    %c1_33 = arith.constant 1 : index
    %28 = vector.load %arg3[%c0_30, %c0_31, %c0_32, %c1_33] : memref<1x4x4x256xf32, #tpu.memory_space<vmem>>, vector<1x1x4x128xf32>
    %29 = vector.shape_cast %28 : vector<1x1x4x128xf32> to vector<4x128xf32>
    %cst_34 = arith.constant dense<0.000000e+00> : vector<8x128xf32>
    %30 = tpu.matmul %5, %29, %cst_34 {dimension_numbers = #tpu.dot_dimension_numbers<[1], [0], [0], [1], [0, 0, 1, 1], [], []>} : vector<8x4xf32>, vector<4x128xf32>, vector<8x128xf32> -> vector<8x128xf32>
    %31 = arith.addf %27, %30 : vector<8x128xf32>
    %c0_35 = arith.constant 0 : index
    %c2_36 = arith.constant 2 : index
    %c0_37 = arith.constant 0 : index
    %c0_38 = arith.constant 0 : index
    %32 = vector.load %arg3[%c0_35, %c2_36, %c0_37, %c0_38] : memref<1x4x4x256xf32, #tpu.memory_space<vmem>>, vector<1x1x4x128xf32>
    %33 = vector.shape_cast %32 : vector<1x1x4x128xf32> to vector<4x128xf32>
    %cst_39 = arith.constant dense<0.000000e+00> : vector<8x128xf32>
    %34 = tpu.matmul %7, %33, %cst_39 {dimension_numbers = #tpu.dot_dimension_numbers<[1], [0], [0], [1], [0, 0, 1, 1], [], []>} : vector<8x4xf32>, vector<4x128xf32>, vector<8x128xf32> -> vector<8x128xf32>
    %35 = arith.addf %31, %34 : vector<8x128xf32>
    %c0_40 = arith.constant 0 : index
    %c3_41 = arith.constant 3 : index
    %c0_42 = arith.constant 0 : index
    %c0_43 = arith.constant 0 : index
    %36 = vector.load %arg3[%c0_40, %c3_41, %c0_42, %c0_43] : memref<1x4x4x256xf32, #tpu.memory_space<vmem>>, vector<1x1x4x128xf32>
    %37 = vector.shape_cast %36 : vector<1x1x4x128xf32> to vector<4x128xf32>
    %cst_44 = arith.constant dense<0.000000e+00> : vector<8x128xf32>
    %38 = tpu.matmul %9, %37, %cst_44 {dimension_numbers = #tpu.dot_dimension_numbers<[1], [0], [0], [1], [0, 0, 1, 1], [], []>} : vector<8x4xf32>, vector<4x128xf32>, vector<8x128xf32> -> vector<8x128xf32>
    %39 = arith.addf %35, %38 : vector<8x128xf32>
    %c0_45 = arith.constant 0 : index
    %c2_46 = arith.constant 2 : index
    %c0_47 = arith.constant 0 : index
    %c1_48 = arith.constant 1 : index
    %40 = vector.load %arg3[%c0_45, %c2_46, %c0_47, %c1_48] : memref<1x4x4x256xf32, #tpu.memory_space<vmem>>, vector<1x1x4x128xf32>
    %41 = vector.shape_cast %40 : vector<1x1x4x128xf32> to vector<4x128xf32>
    %cst_49 = arith.constant dense<0.000000e+00> : vector<8x128xf32>
    %42 = tpu.matmul %11, %41, %cst_49 {dimension_numbers = #tpu.dot_dimension_numbers<[1], [0], [0], [1], [0, 0, 1, 1], [], []>} : vector<8x4xf32>, vector<4x128xf32>, vector<8x128xf32> -> vector<8x128xf32>
    %43 = arith.addf %39, %42 : vector<8x128xf32>
    %c0_50 = arith.constant 0 : index
    %c0_51 = arith.constant 0 : index
    %c0_52 = arith.constant 0 : index
    %c9 = arith.constant 9 : index
    %44 = vector.load %arg3[%c0_50, %c0_51, %c0_52, %c9] : memref<1x4x4x256xf32, #tpu.memory_space<vmem>>, vector<1x1x4x128xf32>
    %45 = vector.shape_cast %44 : vector<1x1x4x128xf32> to vector<4x128xf32>
    %cst_53 = arith.constant dense<0.000000e+00> : vector<8x128xf32>
    %46 = tpu.matmul %13, %45, %cst_53 {dimension_numbers = #tpu.dot_dimension_numbers<[1], [0], [0], [1], [0, 0, 1, 1], [], []>} : vector<8x4xf32>, vector<4x128xf32>, vector<8x128xf32> -> vector<8x128xf32>
    %47 = arith.addf %43, %46 : vector<8x128xf32>
    %c0_54 = arith.constant 0 : index
    %c1_55 = arith.constant 1 : index
    %c0_56 = arith.constant 0 : index
    %c9_57 = arith.constant 9 : index
    %48 = vector.load %arg3[%c0_54, %c1_55, %c0_56, %c9_57] : memref<1x4x4x256xf32, #tpu.memory_space<vmem>>, vector<1x1x4x128xf32>
    %49 = vector.shape_cast %48 : vector<1x1x4x128xf32> to vector<4x128xf32>
    %cst_58 = arith.constant dense<0.000000e+00> : vector<8x128xf32>
    %50 = tpu.matmul %15, %49, %cst_58 {dimension_numbers = #tpu.dot_dimension_numbers<[1], [0], [0], [1], [0, 0, 1, 1], [], []>} : vector<8x4xf32>, vector<4x128xf32>, vector<8x128xf32> -> vector<8x128xf32>
    %51 = arith.addf %47, %50 : vector<8x128xf32>
    %c0_59 = arith.constant 0 : index
    %c0_60 = arith.constant 0 : index
    %c0_61 = arith.constant 0 : index
    %c10 = arith.constant 10 : index
    %52 = vector.load %arg3[%c0_59, %c0_60, %c0_61, %c10] : memref<1x4x4x256xf32, #tpu.memory_space<vmem>>, vector<1x1x4x128xf32>
    %53 = vector.shape_cast %52 : vector<1x1x4x128xf32> to vector<4x128xf32>
    %cst_62 = arith.constant dense<0.000000e+00> : vector<8x128xf32>
    %54 = tpu.matmul %17, %53, %cst_62 {dimension_numbers = #tpu.dot_dimension_numbers<[1], [0], [0], [1], [0, 0, 1, 1], [], []>} : vector<8x4xf32>, vector<4x128xf32>, vector<8x128xf32> -> vector<8x128xf32>
    %55 = arith.addf %51, %54 : vector<8x128xf32>
    %56 = vector.broadcast %18 : vector<8x1xf32> to vector<8x128xf32>
    %57 = arith.addf %55, %56 : vector<8x128xf32>
    %cst_63 = arith.constant 0.000000e+00 : f32
    %58 = vector.broadcast %cst_63 : f32 to vector<8x128xf32>
    %59 = arith.maximumf %57, %58 : vector<8x128xf32>
    %c0_64 = arith.constant 0 : index
    %c0_65 = arith.constant 0 : index
    %c0_66 = arith.constant 0 : index
    %60 = vector.load %arg4[%c0_64, %c0_65, %c0_66] : memref<1x8x128xf32, #tpu.memory_space<vmem>>, vector<1x8x128xf32>
    %61 = vector.shape_cast %60 : vector<1x8x128xf32> to vector<8x128xf32>
    %62 = vector.shape_cast %59 : vector<8x128xf32> to vector<1x8x128xf32>
    tpu.vector_store %arg4[%c0_64, %c0_65, %c0_66], %62 {strides = array<i32>} : memref<1x8x128xf32, #tpu.memory_space<vmem>>, vector<1x8x128xf32>,
    return
  }
  func.func @transform_0(%arg0: i32) -> (i32, i32, i32) {
    %c0_i32 = arith.constant 0 : i32
    %c0_i32_0 = arith.constant 0 : i32
    %c0_i32_1 = arith.constant 0 : i32
    %c0_i32_2 = arith.constant 0 : i32
    return %c0_i32, %c0_i32_0, %c0_i32_1 : i32, i32, i32
  }
  func.func @transform_1(%arg0: i32) -> (i32, i32) {
    %c0_i32 = arith.constant 0 : i32
    %c0_i32_0 = arith.constant 0 : i32
    %c0_i32_1 = arith.constant 0 : i32
    return %c0_i32, %c0_i32_0 : i32, i32
  }
  func.func @transform_2(%arg0: i32) -> (i32, i32, i32, i32) {
    %c0_i32 = arith.constant 0 : i32
    %c0_i32_0 = arith.constant 0 : i32
    %c0_i32_1 = arith.constant 0 : i32
    %c0_i32_2 = arith.constant 0 : i32
    return %arg0, %c0_i32, %c0_i32_0, %c0_i32_1 : i32, i32, i32, i32
  }
  func.func @transform_3(%arg0: i32) -> (i32, i32, i32) {
    %c0_i32 = arith.constant 0 : i32
    %c0_i32_0 = arith.constant 0 : i32
    %c0_i32_1 = arith.constant 0 : i32
    return %arg0, %c0_i32, %c0_i32_0 : i32, i32, i32
  }
}

</mosaic_0001>

<bundles_post_ra>
// kernel: conv_bn_forward.1
= control target key start
LH: loop header
LB: loop body
LE: loop exit
PB: predicated region body
PF: predicated region fallthrough
CT: control target
= control target key end

     0   :  { %s1143_s12 = smov 0   ;;  %s1250_s0 = inlined_call_operand.vmem [shape: f32[9,8,4], index: 0, kind: input, shape index: {}]   ;;  %s1251_s1 = inlined_call_operand.vmem [shape: f32[8,1], index: 1, kind: input, shape index: {}]   ;;  %s1252_s2 = inlined_call_operand.vmem [shape: f32[2,4,4,256], index: 2, kind: input, shape index: {}]   ;;  %s1253_s3 = inlined_call_operand.vmem [shape: f32[2,8,128], index: 3, kind: output, shape index: {}]  }
   0x1 LB: > { %s986_s13 = sadd.s32 4294967295, %s1115_s12   ;;  %p990_p0 = scmp.ge.s32.totalorder %s1115_s12, 1  ;;  %s1115_s12 = sphi %s1143_s12, %s13_s12  }
   0x2   : > { %p137_p1 = scmp.lt.s32.totalorder %s1115_s12, 3 }
   0x4   : > { %p138_p2 = pnand %p990_p0, %p137_p1 }
   0x5   : > { %p160_p3 = scmp.lt.s32.totalorder (!%p138_p2), %s986_s13, 1  ;;  %v1117_v0 = vmov (!%p138_p2), 0.0   ;;  %vm1118_vm0 = vmmov (!%p138_p2), 0   ;;  %vm194_vm1 = vcmask (!%p138_p2), 1043456   ;;  %v169_v1 = vld [vmem:[%s1250_s0] sm:$0xff] (!%p138_p2)  ;;  %vm190_vm2 = vcmask (!%p138_p2), 31744  }
   0x6   : > { %141 = sbr.rel (%p138_p2) target bundleno = 369 (0x171), region = 32  ;;  %1051 = vmatprep.subr.mxu1 (!%p138_p2), %v1117_v0  ;;  %1046 = vmatprep.subr.mxu0 (!%p138_p2), %v1117_v0  ;;  %v994_v4 = vld [vmem:[%s1250_s0 + $0x8] sm:$0xff] (!%p138_p2)  ;;  %s1119_s22 = smov (!%p138_p2), 127   ;;  %v996_v10 = vld [vmem:[%s1250_s0 + $0x18] sm:$0xff] (!%p138_p2)  ;;  %v1120_v12 = vmov (!%p138_p2), 0   ;;  %v186_v14 = vld [vmem:[%s1251_s1] sm:$0xff] (!%p138_p2) }
   0x7   : > { %1053 = vmatprep.mubr.msk.f32.mxu1 (!%p138_p2), %vm1118_vm0, %v1117_v0  ;;  %1048 = vmatprep.mubr.msk.f32.mxu0 (!%p138_p2), %vm1118_vm0, %v1117_v0  ;;  %s1121_s25 = smov (!%p138_p2), 119   ;;  %s1122_s26 = smov (!%p138_p2), 118   ;;  %vm351_vm3 = vcmask (!%p138_p2), 1039360   ;;  %v995_v19 = vld [vmem:[%s1250_s0 + $0x10] sm:$0xff] (!%p138_p2)  ;;  %vm678_vm4 = vcmask (!%p138_p2), 973824   ;;  %v998_v23 = vld [vmem:[%s1250_s0 + $0x28] sm:$0xff] (!%p138_p2) }
   0x8   : > { %1105 = vset.pattern.permute.xlu0 (!%p138_p2), %v1120_v12  ;;  %v997_v26 = vld [vmem:[%s1250_s0 + $0x20] sm:$0xff] (!%p138_p2)  ;;  %v999_v30 = vld [vmem:[%s1250_s0 + $0x30] sm:$0xff] (!%p138_p2)  ;;  %v1000_v31 = vld [vmem:[%s1250_s0 + $0x38] sm:$0xff] (!%p138_p2)  ;;  %vm847_vm5 = vcmask (!%p138_p2), 965632  }
   0x9   : > { %v1001_v35 = vld [vmem:[%s1250_s0 + $0x40] sm:$0xff] (!%p138_p2) }
   0xd   : > { %s1255_s13 = smov (!%p160_p3, %s986_s13), 1 }
   0xe   : > { %s1027_s14 = sshll.u32 %s1255_s13, 5  ;;  %s993_s16 = sshll.u32 %s1255_s13, 3 }
   0xf   : > { %s1163_s17 = scalar_lea.vmem %s1252_s2, %s1027_s14  ;;  %s168_s19 = scalar_lea.vmem %s1253_s3, %s993_s16 }
  0x10   : > { %v1015_v2 = vld [vmem:[%s1163_s17 + $0x10] sm:$0xff]  ;;  %v344_v3 = vld [vmem:[%s1163_s17] sm:$0xff]  ;;  %v1002_v8 = vld [vmem:[%s1163_s17 + $0x8] sm:$0xf] }
  0x11   : > { %590 = vrot.lane.b32.xlu1 %v1015_v2, %s1119_s22  ;;  %v589_v5 = vcombine.high %v1015_v2, %v1015_v2  ;;  %347 = vrot.lane.b32.xlu0 %v344_v3, %s1119_s22  ;;  %v346_v6 = vcombine.high %v344_v3, %v344_v3  ;;  %v187_v7 = vld [vmem:[%s1163_s17] sm:$0xf]  ;;  %v1009_v9 = vld [vmem:[%s1163_s17 + $0x10] sm:$0xf] }
  0x12   : > { %1052 = vmatpush3.msk.msra.mxu1 %vm194_vm1, %v187_v7  ;;  %1047 = vmatpush3.msk.msra.mxu0 %vm194_vm1, %v1002_v8  ;;  %v1020_v11 = vld [vmem:[%s1163_s17 + $0x8] sm:$0xff]  ;;  %v1012_v22 = vld [vmem:[%s1163_s17 + $0x18] sm:$0xf] }
  0x13   : > { %1054 = vmatmul.mubr.msk.f32.vlgmr.msra.gmra.mrb[0].mxu1 %vm190_vm2, %v169_v1  ;;  %1049 = vmatmul.mubr.msk.f32.vlgmr.msra.gmra.mrb[0].mxu0 %vm190_vm2, %v994_v4  ;;  %v758_v13 = vcombine.high %v1020_v11, %v1020_v11 }
  0x14   : > { %1061 = vmatprep.subr.mxu1 %v1117_v0  ;;  %1056 = vmatprep.subr.mxu0 %v1117_v0 }
  0x15   : > { %592 = vrot.lane.b32.xlu1 %v589_v5, %s1119_s22  ;;  %349 = vrot.lane.b32.xlu0 %v346_v6, %s1119_s22 }
  0x16   : > { %1062 = vmatpush3.msk.msra.mxu1 %vm194_vm1, %v1009_v9  ;;  %1063 = vmatprep.mubr.msk.f32.mxu1 %vm1118_vm0, %v1117_v0 }
  0x17   : > { %1071 = vmatprep.subr.mxu1 %v1117_v0  ;;  %1058 = vmatprep.mubr.msk.f32.mxu0 %vm1118_vm0, %v1117_v0 }
  0x18   : > { %1064 = vmatmul.mubr.msk.f32.vlgmr.msra.gmra.mrb[2].mxu1 %vm190_vm2, %v996_v10 }
  0x19   : > { %676 = vrot.lane.b32.xlu1 %v346_v6, %s1121_s25  ;;  %674 = vrot.lane.b32.xlu0 %v344_v3, %s1121_s25 }
  0x1a   : > { %1073 = vmatprep.mubr.msk.f32.mxu1 %vm1118_vm0, %v1117_v0 }
  0x1d   : > { %761 = vrot.lane.b32.xlu1 %v758_v13, %s1121_s25  ;;  %759 = vrot.lane.b32.xlu0 %v1020_v11, %s1121_s25 }
  0x21   : > { %845 = vrot.lane.b32.xlu1 %v346_v6, %s1122_s26  ;;  %843 = vrot.lane.b32.xlu0 %v344_v3, %s1122_s26 }
  0x25   : > { %927 = vperm.xlu0 %1105, %v186_v14  }
  0x83   : > { %v591_v15 = vpop.permute.xlu1 %590  ;;  %v348_v16 = vpop.permute.xlu0 %347 }
  0x87   : > { %v593_v17 = vpop.permute.xlu1 %592  ;;  %v350_v18 = vpop.permute.xlu0 %349 }
  0x88   : > { %v594_v20 = vsel %vm351_vm3, %v591_v15, %v593_v17  ;;  %v352_v21 = vsel %vm351_vm3, %v348_v16, %v350_v18 }
  0x89   : > { %1057 = vmatpush3.msk.msra.mxu0 %vm194_vm1, %v352_v21  ;;  %1072 = vmatpush3.msk.msra.mxu1 %vm194_vm1, %v594_v20 }
  0x8a   : > { %1059 = vmatmul.mubr.msk.f32.vlgmr.msra.gmra.mrb[2].mxu0 %vm190_vm2, %v995_v19  ;;  %1066 = vmatprep.subr.mxu0 %v1117_v0 }
  0x8b   : > { %v677_v24 = vpop.permute.xlu1 %676  ;;  %v675_v25 = vpop.permute.xlu0 %674  ;;  %1067 = vmatpush3.msk.msra.mxu0 %vm194_vm1, %v1012_v22  ;;  %1068 = vmatprep.mubr.msk.f32.mxu0 %vm1118_vm0, %v1117_v0 }
  0x8c   : > { %v679_v27 = vsel %vm678_vm4, %v675_v25, %v677_v24  ;;  %1076 = vmatprep.subr.mxu0 %v1117_v0  ;;  %1081 = vmatprep.subr.mxu1 %v1117_v0 }
  0x8d   : > { %1074 = vmatmul.mubr.msk.f32.vlgmr.msra.gmra.mrb[4].mxu1 %vm190_vm2, %v998_v23 }
  0x8e   : > { %1069 = vmatmul.mubr.msk.f32.vlgmr.msra.gmra.mrb[4].mxu0 %vm190_vm2, %v997_v26  ;;  %1083 = vmatprep.mubr.msk.f32.mxu1 %vm1118_vm0, %v1117_v0 }
  0x8f   : > { %1077 = vmatpush3.msk.msra.mxu0 %vm194_vm1, %v679_v27  ;;  %v762_v28 = vpop.permute.xlu1 %761  ;;  %v760_v29 = vpop.permute.xlu0 %759  ;;  %1078 = vmatprep.mubr.msk.f32.mxu0 %vm1118_vm0, %v1117_v0 }
  0x90   : > { %v763_v32 = vsel %vm678_vm4, %v760_v29, %v762_v28  ;;  %1086 = vmatprep.subr.mxu0 %v1117_v0 }
  0x91   : > { %1082 = vmatpush3.msk.msra.mxu1 %vm194_vm1, %v763_v32 }
  0x92   : > { %1079 = vmatmul.mubr.msk.f32.vlgmr.msra.gmra.mrb[6].mxu0 %vm190_vm2, %v999_v30  ;;  %1084 = vmatmul.mubr.msk.f32.vlgmr.msra.gmra.mrb[6].mxu1 %vm190_vm2, %v1000_v31 }
  0x93   : > { %v846_v33 = vpop.permute.xlu1 %845  ;;  %v844_v34 = vpop.permute.xlu0 %843  ;;  %1088 = vmatprep.mubr.msk.f32.mxu0 %vm1118_vm0, %v1117_v0 }
  0x94   : > { %v848_v36 = vsel %vm847_vm5, %v844_v34, %v846_v33 }
  0x95   : > { %1087 = vmatpush3.msk.msra.mxu0 %vm194_vm1, %v848_v36 }
  0x96   : > { %1089 = vmatmul.mubr.msk.f32.vlgmr.msra.gmra.mrb[8].mxu0 %vm190_vm2, %v1001_v35 }
  0xa4   : > { %v928_v61 = vpop.permute.xlu0 %927 }
  0xe6   : > { %v264_v37 = vpop.f32.mrb[0].mxu0  ;;  %v340_v38 = vpop.f32.mrb[0].mxu1 }
  0xe7   : > { %v1050_v39 = vpop.f32.mrb[1].mxu0  ;;  %v341_v40 = vadd.f32 %v340_v38, %v264_v37  ;;  %v1055_v41 = vpop.f32.mrb[1].mxu1 }
  0xeb   : > { %v503_v42 = vpop.f32.mrb[2].mxu1 }
  0xec   : > { %v1065_v43 = vpop.f32.mrb[3].mxu1 }
 0x15d   : > { %v424_v44 = vpop.f32.mrb[2].mxu0 }
 0x15e   : > { %v428_v45 = vadd.f32 %v424_v44, %v341_v40  ;;  %v1060_v46 = vpop.f32.mrb[3].mxu0 }
 0x160   : > { %v507_v47 = vadd.f32 %v503_v42, %v428_v45  ;;  %v666_v48 = vpop.f32.mrb[4].mxu1 }
 0x161   : > { %v582_v49 = vpop.f32.mrb[4].mxu0  ;;  %v1075_v50 = vpop.f32.mrb[5].mxu1 }
 0x162   : > { %v586_v51 = vadd.f32 %v582_v49, %v507_v47  ;;  %v1070_v52 = vpop.f32.mrb[5].mxu0 }
 0x164   : > { %v670_v53 = vadd.f32 %v666_v48, %v586_v51 }
 0x165   : > { %v751_v54 = vpop.f32.mrb[6].mxu0  ;;  %v835_v55 = vpop.f32.mrb[6].mxu1 }
 0x166   : > { %v755_v56 = vadd.f32 %v751_v54, %v670_v53  ;;  %v1080_v57 = vpop.f32.mrb[7].mxu0  ;;  %v1085_v58 = vpop.f32.mrb[7].mxu1 }
 0x168   : > { %v839_v59 = vadd.f32 %v835_v55, %v755_v56 }
 0x169   : > { %v920_v60 = vpop.f32.mrb[8].mxu0 }
 0x16a   : > { %v924_v62 = vadd.f32 %v920_v60, %v839_v59  ;;  %v1090_v63 = vpop.f32.mrb[9].mxu0 }
 0x16c   : > { %v930_v0 = vadd.f32 %v928_v61, %v924_v62 }
 0x16e   : > { %v931_v1 = vmax.f32 %v930_v0, 0.0 }
 0x170   : > { %932 = vst [vmem:[%s168_s19] sm:$0xff] %v931_v1 }
 0x171 PF: > { %s13_s12 = sadd.s32 1, %s1115_s12  }
 0x172   : > { %p10_p4 = scmp.ge.s32.totalorder %s13_s12, 4  }
 0x174   :  { %12 = sbr.rel (!%p10_p4) target bundleno = 1 (0x1), region = 73 }

</bundles_post_ra>
